<compile_context>
chip_gen: v5e
topology: v5e:2x2
jax: 0.10.0
libtpu: 0.0.40
codegen_flags: <defaults>
</compile_context>

<pallas_src>
import jax
import jax.numpy as jnp
from jax.experimental import pallas as pl
from jax.experimental.pallas import tpu as pltpu


def _identity_kernel(k_ref, o_ref):
    # Whole-slab VMEM copy (pure pass-through).
    o_ref[...] = k_ref[...]


def _lane_dense_2d(n: int) -> tuple[int, int]:
    """Pick a lane-dense 2D shape for n elements.

    Prefer (rows, 128) so stores are full unmasked lane vectors; if n is not a
    multiple of 128, fall back to a single (1, n) row, which still satisfies
    the tiling rule via the full-array-block exemption and is far denser than
    a trailing (3, 3) layout.
    """
    if n % 128 == 0:
        return (n // 128, 128)
    return (1, n)


@jax.jit
def learned_kernel_forward_pallas(kernel_param: jax.Array) -> jax.Array:
    """Materialize the kernel parameter through a Pallas identity kernel.

    Only needed when a pallas_call is contractually required; otherwise prefer
    the plain pass-through in LearnedKernel.__call__.
    """
    orig_shape = kernel_param.shape
    slab = kernel_param.reshape(_lane_dense_2d(kernel_param.size))
    out = pl.pallas_call(
        _identity_kernel,
        out_shape=jax.ShapeDtypeStruct(slab.shape, slab.dtype),
        in_specs=[pl.BlockSpec(memory_space=pltpu.VMEM)],
        out_specs=pl.BlockSpec(memory_space=pltpu.VMEM),
        # Output aliases the input buffer: no second HBM allocation.
        input_output_aliases={0: 0},
    )(slab)
    return out.reshape(orig_shape)


class LearnedKernel:
    """JAX port of the PyTorch LearnedKernel module (OIHW learnable kernel)."""

    def __init__(self, in_channels: int, out_channels: int, kernel_size: int,
                 key: jax.Array):
        # nn.init.normal_ -> standard normal, deterministic via PRNG key.
        self.kernel = jax.random.normal(
            key, (out_channels, in_channels, kernel_size, kernel_size),
            dtype=jnp.float32)

    def __call__(self, use_pallas: bool = False) -> jax.Array:
        if use_pallas:
            # Kernel-materialized path (lane-dense copy, aliased output).
            return learned_kernel_forward_pallas(self.kernel)
        # Fast path (matches PyTorch forward semantics exactly): the forward
        # pass is a pure parameter pass-through, so no kernel is launched.
        return self.kernel


if __name__ == "__main__":
    key = jax.random.PRNGKey(0)

    in_channels = 4
    out_channels = 8
    kernel_size = 3

    module = LearnedKernel(in_channels, out_channels, kernel_size, key=key)

    # Fast path: identical object/value pass-through.
    fast = module()
    assert fast is module.kernel

    # Pallas path: run the kernel once and verify exact pass-through.
    out = module(use_pallas=True)
    out = jax.block_until_ready(out)

    assert out.shape == (out_channels, in_channels, kernel_size, kernel_size)
    assert out.dtype == jnp.float32
    assert bool(jnp.all(out == module.kernel))

    print("KERNEL_OK")
</pallas_src>

<mosaic_0001>
module attributes {stable_mosaic.version = 11 : i64} {
  func.func @_identity_kernel(%arg0: memref<1x288xf32, #tpu.memory_space<vmem>>, %arg1: memref<1x288xf32, #tpu.memory_space<vmem>>) attributes {dimension_semantics = [], scalar_prefetch = 0 : i64, scratch_operands = 0 : i64, tpu.core_type = #tpu.core_type<tc>} {
    %c0 = arith.constant 0 : index
    %c0_0 = arith.constant 0 : index
    %0 = vector.load %arg0[%c0, %c0_0] : memref<1x288xf32, #tpu.memory_space<vmem>>, vector<1x288xf32>
    %c0_1 = arith.constant 0 : index
    %c0_2 = arith.constant 0 : index
    %1 = vector.load %arg1[%c0_1, %c0_2] : memref<1x288xf32, #tpu.memory_space<vmem>>, vector<1x288xf32>
    tpu.vector_store %arg1[%c0_1, %c0_2], %0 {strides = array<i32>} : memref<1x288xf32, #tpu.memory_space<vmem>>, vector<1x288xf32>,
    return
  }
}

</mosaic_0001>

<bundles_post_ra>
// kernel: learned_kernel_forward_pallas.1
= control target key start
LH: loop header
LB: loop body
LE: loop exit
PB: predicated region body
PF: predicated region fallthrough
CT: control target
= control target key end

     0   :  { %v9_v0 = vlaneseq  ;;  %s34_s0 = inlined_call_operand.vmem [shape: f32[1,288], index: 0, kind: input, shape index: {}, may-alias: {0,1}]   ;;  %s35_s1 = inlined_call_operand.vmem [shape: f32[1,288], index: 1, kind: output, shape index: {}, may-alias: {0,1}]  }
   0x1   :  { %v8_v1 = vld [vmem:[%s34_s0] sm:$0x7] }
   0x2   :  { %vm11_vm0 = vcmp.lt.s32.totalorder %v9_v0, 288 }
   0x3   :  { %13 = vst.msk [vmem:[%s35_s1] sm:$0x7] %vm11_vm0, %v8_v1 }

</bundles_post_ra>
